<compile_context>
chip_gen: v7x
topology: tpu7x:2x2x1
jax: 0.10.0
libtpu: 0.0.40
codegen_flags: <defaults>
</compile_context>

<pallas_src>
import jax
import jax.numpy as jnp
from jax.experimental import pallas as pl
from jax.experimental.pallas import tpu as pltpu


def _eltwise_prod_scoring_kernel(h_ref, u_ref, whs_ref, wat_ref, rep_ref,
                                 sel_ref, small_ref, out_ref):
    # Per-grid-step shapes:
    #   h_ref     : (TB, h_dim)
    #   u_ref     : (TB, A*a_dim)          lane-dense flattened all_u_t
    #   whs_ref   : (h_dim, dot)           W_h with w_o folded into its columns
    #   wat_ref   : (dot, a_dim)           W_a transposed
    #   rep_ref   : (a_dim, A*a_dim)       0/1 replication matrix
    #   sel_ref   : (A*a_dim, A)           0/1 segment-sum selector
    #   small_ref : (3, dot)               rows = [b_h*w_o, b_a, b_o (broadcast)]
    #   out_ref   : (A, TB)                transposed, lane-dense store
    bh_s = small_ref[0:1, :]        # (1, dot)  = b_h * w_o
    b_a = small_ref[1:2, :]         # (1, dot)
    b_o = small_ref[2:3, 0:1]       # (1, 1)

    # tsc[b, k] = (h @ W_h + b_h)[b, k] * w_o[k]   (w_o pre-folded into whs/bh_s)
    tsc = jnp.dot(h_ref[...], whs_ref[...],
                  preferred_element_type=jnp.float32) + bh_s        # (TB, dot)

    # Reassociated contraction: v[b, j] = sum_k tsc[b, k] * W_a[j, k]
    v = jnp.dot(tsc, wat_ref[...],
                preferred_element_type=jnp.float32)                 # (TB, a_dim)

    # Per-row constant from b_a and the output bias.
    c0 = jnp.sum(tsc * b_a, axis=-1, keepdims=True) + b_o           # (TB, 1)

    # Replicate v across the A action slots via a 0/1 matrix on the MXU
    # (avoids a lane-relayout tile/reshape).
    v_rep = jnp.dot(v, rep_ref[...],
                    preferred_element_type=jnp.float32)             # (TB, A*a_dim)

    prod = u_ref[...].astype(jnp.float32) * v_rep                   # (TB, A*a_dim)

    # Segmented lane-reduce per action slot, again as a K=256 MXU matmul.
    logits = jnp.dot(prod, sel_ref[...],
                     preferred_element_type=jnp.float32) + c0       # (TB, A)

    # Lane-dense store: batch tile on the 128-lane axis.
    out_ref[...] = logits.T.astype(out_ref.dtype)                   # (A, TB)


def eltwise_prod_scoring(h, all_u_t, w_h, b_h, w_a, b_a, w_o, b_o,
                         *, block_b=1024, input_dtype=None):
    """h: (B, h_dim), all_u_t: (B, A, a_dim) -> logits (B, A) float32.

    block_b: max batch tile (multiple of 128).
    input_dtype: e.g. jnp.bfloat16 to halve the HBM traffic of the streamed
      activations (h, all_u_t). This is an *input precision* tradeoff; weights
      and all accumulation stay float32. None keeps pure float32.
    """
    B, h_dim = h.shape
    _, A, a_dim = all_u_t.shape
    dot_dim = w_h.shape[1]

    if input_dtype is not None:
        # Ideally the caller already supplies these in input_dtype so the cast
        # fuses upstream instead of adding an extra HBM pass.
        h = h.astype(input_dtype)
        all_u_t = all_u_t.astype(input_dtype)

    # Free trailing-dim flatten: (B, A, a_dim) -> (B, A*a_dim), lane-dense.
    u_flat = all_u_t.reshape(B, A * a_dim)

    # Fold the output weight w_o into the h projection (column scaling).
    w_o32 = w_o.astype(jnp.float32)
    whs = w_h.astype(jnp.float32) * w_o32[None, :]          # (h_dim, dot)
    bh_s = b_h.astype(jnp.float32) * w_o32                  # (dot,)
    wat = w_a.astype(jnp.float32).T                         # (dot, a_dim)

    # Constant 0/1 matrices: replicate v across A slots / segmented reduce.
    m = jnp.arange(A * a_dim)
    rep = (m[None, :] % a_dim == jnp.arange(a_dim)[:, None]).astype(jnp.float32)
    sel = (m[:, None] // a_dim == jnp.arange(A)[None, :]).astype(jnp.float32)

    # Pack the small per-feature params into one (3, dot) operand.
    small = jnp.stack([
        bh_s,
        b_a.astype(jnp.float32),
        jnp.broadcast_to(jnp.asarray(b_o, jnp.float32), (dot_dim,)),
    ], axis=0)

    # Batch tiling. No padding: Pallas handles the ragged last block (garbage
    # rows only feed output columns that are never written back). When B > 128,
    # keep the tile 128-aligned and aim for >= 2 grid steps so v7x's two
    # TensorCores both get work on the "parallel" batch axis.
    if B <= 128:
        tb = B
    else:
        assert block_b % 128 == 0, "block_b must be a multiple of 128"
        tb = min(block_b, ((pl.cdiv(B, 2) + 127) // 128) * 128)
    grid = (pl.cdiv(B, tb),)

    out_t = pl.pallas_call(
        _eltwise_prod_scoring_kernel,
        out_shape=jax.ShapeDtypeStruct((A, B), jnp.float32),
        grid_spec=pltpu.PrefetchScalarGridSpec(
            num_scalar_prefetch=0,
            grid=grid,
            in_specs=[
                pl.BlockSpec((tb, h_dim), lambda i: (i, 0)),           # h
                pl.BlockSpec((tb, A * a_dim), lambda i: (i, 0)),       # u_flat
                pl.BlockSpec((h_dim, dot_dim), lambda i: (0, 0)),      # whs
                pl.BlockSpec((dot_dim, a_dim), lambda i: (0, 0)),      # wat
                pl.BlockSpec((a_dim, A * a_dim), lambda i: (0, 0)),    # rep
                pl.BlockSpec((A * a_dim, A), lambda i: (0, 0)),        # sel
                pl.BlockSpec((3, dot_dim), lambda i: (0, 0)),          # small
            ],
            out_specs=pl.BlockSpec((A, tb), lambda i: (0, i)),
        ),
        compiler_params=pltpu.CompilerParams(
            dimension_semantics=("parallel",)),
    )(h, u_flat, whs, wat, rep, sel, small)

    # Back to (B, A). (If the consumer accepts (A, B), drop this transpose.)
    return out_t.T


def _reference(h, all_u_t, w_h, b_h, w_a, b_a, w_o, b_o):
    target = h @ w_h + b_h                                        # (B, dot)
    context = jnp.einsum('bad,dk->bak', all_u_t, w_a) + b_a       # (B, A, dot)
    eltprod = target[:, None, :] * context
    return jnp.einsum('bak,k->ba', eltprod, w_o) + b_o            # (B, A)


if __name__ == "__main__":
    h_dim, a_dim, dot_dim, A = 32, 32, 256, 8

    key = jax.random.PRNGKey(0)
    k = jax.random.split(key, 8)

    w_h = jax.random.normal(k[0], (h_dim, dot_dim), jnp.float32) * 0.05
    b_h = jax.random.normal(k[1], (dot_dim,), jnp.float32) * 0.05
    w_a = jax.random.normal(k[2], (a_dim, dot_dim), jnp.float32) * 0.05
    b_a = jax.random.normal(k[3], (dot_dim,), jnp.float32) * 0.05
    w_o = jax.random.normal(k[4], (dot_dim,), jnp.float32) * 0.05
    b_o = jax.random.normal(k[5], (), jnp.float32) * 0.05

    # Three f32 paths: single-step grid (B <= 128), exact multi-step tiling,
    # and multi-step tiling with a ragged last block (no padding).
    for B in (2, 256, 132):
        h = jax.random.normal(jax.random.fold_in(k[6], B), (B, h_dim), jnp.float32)
        all_u_t = jax.random.normal(jax.random.fold_in(k[7], B), (B, A, a_dim),
                                    jnp.float32)

        out = eltwise_prod_scoring(h, all_u_t, w_h, b_h, w_a, b_a, w_o, b_o)
        out = jax.block_until_ready(out)

        ref = _reference(h, all_u_t, w_h, b_h, w_a, b_a, w_o, b_o)
        assert out.shape == (B, A), (out.shape, B, A)
        assert jnp.allclose(out, ref, atol=1e-3, rtol=1e-3), (
            B, float(jnp.max(jnp.abs(out - ref))))

    # bf16 activation-streaming path (input precision loss -> loose tolerance).
    B = 256
    h = jax.random.normal(jax.random.fold_in(k[6], B), (B, h_dim), jnp.float32)
    all_u_t = jax.random.normal(jax.random.fold_in(k[7], B), (B, A, a_dim),
                                jnp.float32)
    out_bf16 = eltwise_prod_scoring(h, all_u_t, w_h, b_h, w_a, b_a, w_o, b_o,
                                    input_dtype=jnp.bfloat16)
    out_bf16 = jax.block_until_ready(out_bf16)
    ref = _reference(h, all_u_t, w_h, b_h, w_a, b_a, w_o, b_o)
    assert out_bf16.shape == (B, A)
    assert jnp.allclose(out_bf16, ref, atol=2e-2, rtol=2e-2), (
        float(jnp.max(jnp.abs(out_bf16 - ref))))

    print("KERNEL_OK")
</pallas_src>

<mosaic_0001>
module attributes {stable_mosaic.version = 11 : i64} {
  func.func @_eltwise_prod_scoring_kernel(%arg0: i32, %arg1: memref<2x32xf32, #tpu.memory_space<vmem>>, %arg2: memref<2x256xf32, #tpu.memory_space<vmem>>, %arg3: memref<32x256xf32, #tpu.memory_space<vmem>>, %arg4: memref<256x32xf32, #tpu.memory_space<vmem>>, %arg5: memref<32x256xf32, #tpu.memory_space<vmem>>, %arg6: memref<256x8xf32, #tpu.memory_space<vmem>>, %arg7: memref<3x256xf32, #tpu.memory_space<vmem>>, %arg8: memref<8x2xf32, #tpu.memory_space<vmem>>) attributes {dimension_semantics = [#tpu.dimension_semantics<parallel>], iteration_bounds = array<i64: 1>, scalar_prefetch = 0 : i64, scratch_operands = 0 : i64, tpu.core_type = #tpu.core_type<tc>, window_params = [{transform_indices = @transform_0, window_bounds = array<i64: 2, 32>}, {transform_indices = @transform_1, window_bounds = array<i64: 2, 256>}, {pipeline_mode = #tpu.pipeline_mode<synchronous>, transform_indices = @transform_2, window_bounds = array<i64: 32, 256>}, {pipeline_mode = #tpu.pipeline_mode<synchronous>, transform_indices = @transform_3, window_bounds = array<i64: 256, 32>}, {pipeline_mode = #tpu.pipeline_mode<synchronous>, transform_indices = @transform_4, window_bounds = array<i64: 32, 256>}, {pipeline_mode = #tpu.pipeline_mode<synchronous>, transform_indices = @transform_5, window_bounds = array<i64: 256, 8>}, {pipeline_mode = #tpu.pipeline_mode<synchronous>, transform_indices = @transform_6, window_bounds = array<i64: 3, 256>}, {transform_indices = @transform_7, window_bounds = array<i64: 8, 2>}]} {
    %c0 = arith.constant 0 : index
    %c0_0 = arith.constant 0 : index
    %0 = vector.load %arg7[%c0, %c0_0] : memref<3x256xf32, #tpu.memory_space<vmem>>, vector<1x256xf32>
    %c1 = arith.constant 1 : index
    %c0_1 = arith.constant 0 : index
    %1 = vector.load %arg7[%c1, %c0_1] : memref<3x256xf32, #tpu.memory_space<vmem>>, vector<1x256xf32>
    %c2 = arith.constant 2 : index
    %c0_2 = arith.constant 0 : index
    %2 = vector.load %arg7[%c2, %c0_2] : memref<3x256xf32, #tpu.memory_space<vmem>>, vector<1x1xf32>
    %c0_3 = arith.constant 0 : index
    %c0_4 = arith.constant 0 : index
    %3 = vector.load %arg1[%c0_3, %c0_4] : memref<2x32xf32, #tpu.memory_space<vmem>>, vector<2x32xf32>
    %c0_5 = arith.constant 0 : index
    %c0_6 = arith.constant 0 : index
    %4 = vector.load %arg3[%c0_5, %c0_6] : memref<32x256xf32, #tpu.memory_space<vmem>>, vector<32x256xf32>
    %cst = arith.constant dense<0.000000e+00> : vector<2x256xf32>
    %5 = tpu.matmul %3, %4, %cst {dimension_numbers = #tpu.dot_dimension_numbers<[1], [0], [0], [1], [0, 0, 1, 1], [], []>} : vector<2x32xf32>, vector<32x256xf32>, vector<2x256xf32> -> vector<2x256xf32>
    %6 = vector.broadcast %0 : vector<1x256xf32> to vector<2x256xf32>
    %7 = arith.addf %5, %6 : vector<2x256xf32>
    %c0_7 = arith.constant 0 : index
    %c0_8 = arith.constant 0 : index
    %8 = vector.load %arg4[%c0_7, %c0_8] : memref<256x32xf32, #tpu.memory_space<vmem>>, vector<256x32xf32>
    %cst_9 = arith.constant dense<0.000000e+00> : vector<2x32xf32>
    %9 = tpu.matmul %7, %8, %cst_9 {dimension_numbers = #tpu.dot_dimension_numbers<[1], [0], [0], [1], [0, 0, 1, 1], [], []>} : vector<2x256xf32>, vector<256x32xf32>, vector<2x32xf32> -> vector<2x32xf32>
    %10 = vector.broadcast %1 : vector<1x256xf32> to vector<2x256xf32>
    %11 = arith.mulf %7, %10 : vector<2x256xf32>
    %cst_10 = arith.constant dense<0.000000e+00> : vector<2xf32>
    %12 = vector.multi_reduction <add>, %11, %cst_10 [1] : vector<2x256xf32> to vector<2xf32>
    %13 = vector.shape_cast %12 : vector<2xf32> to vector<2x1xf32>
    %14 = vector.broadcast %2 : vector<1x1xf32> to vector<2x1xf32>
    %15 = arith.addf %13, %14 : vector<2x1xf32>
    %c0_11 = arith.constant 0 : index
    %c0_12 = arith.constant 0 : index
    %16 = vector.load %arg5[%c0_11, %c0_12] : memref<32x256xf32, #tpu.memory_space<vmem>>, vector<32x256xf32>
    %cst_13 = arith.constant dense<0.000000e+00> : vector<2x256xf32>
    %17 = tpu.matmul %9, %16, %cst_13 {dimension_numbers = #tpu.dot_dimension_numbers<[1], [0], [0], [1], [0, 0, 1, 1], [], []>} : vector<2x32xf32>, vector<32x256xf32>, vector<2x256xf32> -> vector<2x256xf32>
    %c0_14 = arith.constant 0 : index
    %c0_15 = arith.constant 0 : index
    %18 = vector.load %arg2[%c0_14, %c0_15] : memref<2x256xf32, #tpu.memory_space<vmem>>, vector<2x256xf32>
    %19 = arith.mulf %18, %17 : vector<2x256xf32>
    %c0_16 = arith.constant 0 : index
    %c0_17 = arith.constant 0 : index
    %20 = vector.load %arg6[%c0_16, %c0_17] : memref<256x8xf32, #tpu.memory_space<vmem>>, vector<256x8xf32>
    %cst_18 = arith.constant dense<0.000000e+00> : vector<2x8xf32>
    %21 = tpu.matmul %19, %20, %cst_18 {dimension_numbers = #tpu.dot_dimension_numbers<[1], [0], [0], [1], [0, 0, 1, 1], [], []>} : vector<2x256xf32>, vector<256x8xf32>, vector<2x8xf32> -> vector<2x8xf32>
    %22 = vector.broadcast %15 : vector<2x1xf32> to vector<2x8xf32>
    %23 = arith.addf %21, %22 : vector<2x8xf32>
    %24 = tpu.transpose %23, [1, 0] : vector<2x8xf32> -> vector<8x2xf32>
    %c0_19 = arith.constant 0 : index
    %c0_20 = arith.constant 0 : index
    %25 = vector.load %arg8[%c0_19, %c0_20] : memref<8x2xf32, #tpu.memory_space<vmem>>, vector<8x2xf32>
    tpu.vector_store %arg8[%c0_19, %c0_20], %24 {strides = array<i32>} : memref<8x2xf32, #tpu.memory_space<vmem>>, vector<8x2xf32>,
    return
  }
  func.func @transform_0(%arg0: i32) -> (i32, i32) {
    %c0_i32 = arith.constant 0 : i32
    %c0_i32_0 = arith.constant 0 : i32
    return %arg0, %c0_i32 : i32, i32
  }
  func.func @transform_1(%arg0: i32) -> (i32, i32) {
    %c0_i32 = arith.constant 0 : i32
    %c0_i32_0 = arith.constant 0 : i32
    return %arg0, %c0_i32 : i32, i32
  }
  func.func @transform_2(%arg0: i32) -> (i32, i32) {
    %c0_i32 = arith.constant 0 : i32
    %c0_i32_0 = arith.constant 0 : i32
    %c0_i32_1 = arith.constant 0 : i32
    return %c0_i32, %c0_i32_0 : i32, i32
  }
  func.func @transform_3(%arg0: i32) -> (i32, i32) {
    %c0_i32 = arith.constant 0 : i32
    %c0_i32_0 = arith.constant 0 : i32
    %c0_i32_1 = arith.constant 0 : i32
    return %c0_i32, %c0_i32_0 : i32, i32
  }
  func.func @transform_4(%arg0: i32) -> (i32, i32) {
    %c0_i32 = arith.constant 0 : i32
    %c0_i32_0 = arith.constant 0 : i32
    %c0_i32_1 = arith.constant 0 : i32
    return %c0_i32, %c0_i32_0 : i32, i32
  }
  func.func @transform_5(%arg0: i32) -> (i32, i32) {
    %c0_i32 = arith.constant 0 : i32
    %c0_i32_0 = arith.constant 0 : i32
    %c0_i32_1 = arith.constant 0 : i32
    return %c0_i32, %c0_i32_0 : i32, i32
  }
  func.func @transform_6(%arg0: i32) -> (i32, i32) {
    %c0_i32 = arith.constant 0 : i32
    %c0_i32_0 = arith.constant 0 : i32
    %c0_i32_1 = arith.constant 0 : i32
    return %c0_i32, %c0_i32_0 : i32, i32
  }
  func.func @transform_7(%arg0: i32) -> (i32, i32) {
    %c0_i32 = arith.constant 0 : i32
    %c0_i32_0 = arith.constant 0 : i32
    return %c0_i32, %arg0 : i32, i32
  }
}

</mosaic_0001>

<bundles_post_ra>
// kernel: tpu_custom_call.1
= control target key start
LH: loop header
LB: loop body
LE: loop exit
PB: predicated region body
PF: predicated region fallthrough
CT: control target
= control target key end

     0   :  { %v660_v3 = vmov 0.0   ;;  %vm50_vm0 = vcmask 261120   ;;  %v40_v62 = vlaneseq  ;;  %vm240_vm1 = vcmask 1041408   ;;  %s968_s2 = inlined_call_operand.vmem [shape: f32[32,256], index: 2, kind: input, shape index: {}]   ;;  %s969_s3 = inlined_call_operand.vmem [shape: f32[256,32], index: 3, kind: input, shape index: {}]   ;;  %s970_s0 = inlined_call_operand.vmem [shape: f32[2,32], index: 0, kind: input, shape index: {}]   ;;  %s971_s6 = inlined_call_operand.vmem [shape: f32[3,256], index: 6, kind: input, shape index: {}]   ;;  %s972_s4 = inlined_call_operand.vmem [shape: f32[32,256], index: 4, kind: input, shape index: {}]   ;;  %s973_s5 = inlined_call_operand.vmem [shape: f32[256,8], index: 5, kind: input, shape index: {}]   ;;  %s974_s1 = inlined_call_operand.vmem [shape: f32[2,256], index: 1, kind: input, shape index: {}]   ;;  %s975_s7 = inlined_call_operand.vmem [shape: f32[8,2], index: 7, kind: output, shape index: {}]  }
   0x1   :  { %v32_v0 = vld [vmem:[%s968_s2 + $0x8] sm:$0xff]  ;;  %v34_v1 = vld [vmem:[%s968_s2 + $0x18] sm:$0xff]  ;;  %v31_v2 = vld [vmem:[%s968_s2] sm:$0xff]  ;;  %118 = vmatprep.mubr.f32.mxu1 %v660_v3  ;;  %326 = vmatprep.mubr.f32.mxu0 %v660_v3  ;;  %vm496_vm2 = vcmask 15360  }
   0x2   :  { %v576_v4 = vpack.c.bf16 %v34_v1, %v32_v0  ;;  %v33_v5 = vld [vmem:[%s968_s2 + $0x10] sm:$0xff]  ;;  %v36_v6 = vld [vmem:[%s968_s2 + $0x28] sm:$0xff]  ;;  %v38_v7 = vld [vmem:[%s968_s2 + $0x38] sm:$0xff]  ;;  %v827_v63 = vshrl.u32 %v40_v62, 7 }
   0x3   :  { %v578_v8 = vpack.c.bf16 %v33_v5, %v31_v2  ;;  %v580_v9 = vpack.c.bf16 %v38_v7, %v36_v6  ;;  %v35_v10 = vld [vmem:[%s968_s2 + $0x20] sm:$0xff]  ;;  %v37_v11 = vld [vmem:[%s968_s2 + $0x30] sm:$0xff]  ;;  %v142_v13 = vld [vmem:[%s969_s3 + $0x88] sm:$0xff] }
   0x4   :  { %577 = vmatprep.subr.bf16.mxu1 %v576_v4  ;;  %v141_v12 = vld [vmem:[%s969_s3 + $0x80] sm:$0xff]  ;;  %v582_v14 = vpack.c.bf16 %v37_v11, %v35_v10  ;;  %v126_v17 = vld [vmem:[%s969_s3 + $0x8] sm:$0xff]  ;;  %v143_v18 = vld [vmem:[%s969_s3 + $0x90] sm:$0xff]  ;;  %v42_v0 = vsub.s32 0, %v827_v63  ;;  %v46_v2 = vsub.s32 1, %v827_v63 }
   0x5   :  { %579 = vmatpush1.bf16.msra.mxu1 %v578_v8  ;;  %v584_v15 = vpack.c.bf16 %v142_v13, %v141_v12  ;;  %v125_v16 = vld [vmem:[%s969_s3] sm:$0xff]  ;;  %v144_v19 = vld [vmem:[%s969_s3 + $0x98] sm:$0xff]  ;;  %v127_v23 = vld [vmem:[%s969_s3 + $0x10] sm:$0xff] }
   0x6   :  { %581 = vmatprep.subr.bf16.mxu1 %v580_v9  ;;  %v30_v20 = vld [vmem:[%s970_s0] sm:$0x3]  ;;  %v586_v21 = vpack.c.bf16 %v126_v17, %v125_v16  ;;  %v588_v22 = vpack.c.bf16 %v144_v19, %v143_v18  ;;  %v128_v24 = vld [vmem:[%s969_s3 + $0x18] sm:$0xff]  ;;  %v146_v26 = vld [vmem:[%s969_s3 + $0xa8] sm:$0xff]  ;;  %v661_v17 = vmov 0  }
   0x7   :  { %v145_v25 = vld [vmem:[%s969_s3 + $0xa0] sm:$0xff]  ;;  %v590_v27 = vpack.c.bf16 %v128_v24, %v127_v23  ;;  %v130_v30 = vld [vmem:[%s969_s3 + $0x28] sm:$0xff]  ;;  %v147_v31 = vld [vmem:[%s969_s3 + $0xb0] sm:$0xff]  ;;  %659 = vset.pattern.permute.xlu0 %v661_v17 }
   0x8   :  { %v592_v28 = vpack.c.bf16 %v146_v26, %v145_v25  ;;  %v129_v29 = vld [vmem:[%s969_s3 + $0x20] sm:$0xff]  ;;  %v148_v32 = vld [vmem:[%s969_s3 + $0xb8] sm:$0xff]  ;;  %v131_v35 = vld [vmem:[%s969_s3 + $0x30] sm:$0xff] }
   0x9   :  { %583 = vmatpush1.bf16.msra.mxu1 %v582_v14  ;;  %v594_v33 = vpack.c.bf16 %v130_v30, %v129_v29  ;;  %v596_v34 = vpack.c.bf16 %v148_v32, %v147_v31  ;;  %v132_v36 = vld [vmem:[%s969_s3 + $0x38] sm:$0xff]  ;;  %v149_v37 = vld [vmem:[%s969_s3 + $0xc0] sm:$0xff]  ;;  %v150_v38 = vld [vmem:[%s969_s3 + $0xc8] sm:$0xff] }
   0xa   :  { %585 = vmatprep.subr.bf16.mxu1 %v584_v15  ;;  %v598_v39 = vpack.c.bf16 %v132_v36, %v131_v35  ;;  %v600_v40 = vpack.c.bf16 %v150_v38, %v149_v37  ;;  %v133_v41 = vld [vmem:[%s969_s3 + $0x40] sm:$0xff]  ;;  %v134_v42 = vld [vmem:[%s969_s3 + $0x48] sm:$0xff]  ;;  %v151_v43 = vld [vmem:[%s969_s3 + $0xd0] sm:$0xff] }
   0xb   :  { %v152_v44 = vld [vmem:[%s969_s3 + $0xd8] sm:$0xff]  ;;  %v602_v45 = vpack.c.bf16 %v134_v42, %v133_v41  ;;  %v135_v47 = vld [vmem:[%s969_s3 + $0x50] sm:$0xff]  ;;  %v153_v49 = vld [vmem:[%s969_s3 + $0xe0] sm:$0xff] }
   0xc   :  { %503 = vmatmul.mubr.msk.f32.vlgmr.msra.gmra.mrb[0].mxu1 %vm50_vm0, %v30_v20  ;;  %v604_v46 = vpack.c.bf16 %v152_v44, %v151_v43  ;;  %v136_v48 = vld [vmem:[%s969_s3 + $0x58] sm:$0xff]  ;;  %v154_v50 = vld [vmem:[%s969_s3 + $0xe8] sm:$0xff]  ;;  %v137_v53 = vld [vmem:[%s969_s3 + $0x60] sm:$0xff] }
   0xd   :  { %587 = vmatpush3.bf16.msra.mxu1 %v586_v21  ;;  %v606_v51 = vpack.c.bf16 %v136_v48, %v135_v47  ;;  %v608_v52 = vpack.c.bf16 %v154_v50, %v153_v49  ;;  %v138_v54 = vld [vmem:[%s969_s3 + $0x68] sm:$0xff]  ;;  %v155_v56 = vld [vmem:[%s969_s3 + $0xf0] sm:$0xff]  ;;  %v156_v57 = vld [vmem:[%s969_s3 + $0xf8] sm:$0xff] }
   0xe   :  { %589 = vmatprep.subr.bf16.mxu1 %v588_v22  ;;  %v610_v55 = vpack.c.bf16 %v138_v54, %v137_v53  ;;  %v612_v58 = vpack.c.bf16 %v156_v57, %v155_v56  ;;  %v139_v59 = vld [vmem:[%s969_s3 + $0x70] sm:$0xff]  ;;  %v140_v60 = vld [vmem:[%s969_s3 + $0x78] sm:$0xff]  ;;  %v26_v1 = vld [vmem:[%s971_s6] ss:$4 sm:$0x3] }
   0xf   :  { %v614_v61 = vpack.c.bf16 %v140_v60, %v139_v59  ;;  %v502_v3 = vld [vmem:[%s971_s6 + $0x1] ss:$4 sm:$0x3]  ;;  %v43_v4 = vrot.slane %v26_v1, %v42_v0  ;;  %v47_v5 = vrot.slane %v26_v1, %v46_v2  ;;  %v252_v18 = vld [vmem:[%s972_s4 + $0x8] sm:$0xff]  ;;  %v254_v19 = vld [vmem:[%s972_s4 + $0x18] sm:$0xff] }
  0x10   :  { %v231_v6 = vrot.slane %v502_v3, %v42_v0  ;;  %v235_v8 = vrot.slane %v502_v3, %v46_v2  ;;  %v251_v20 = vld [vmem:[%s972_s4] sm:$0xff]  ;;  %v616_v21 = vpack.c.bf16 %v254_v19, %v252_v18  ;;  %v253_v22 = vld [vmem:[%s972_s4 + $0x10] sm:$0xff]  ;;  %v256_v24 = vld [vmem:[%s972_s4 + $0x28] sm:$0xff] }
  0x11   :  { %591 = vmatpush3.bf16.msra.mxu1 %v590_v27  ;;  %v618_v23 = vpack.c.bf16 %v253_v22, %v251_v20  ;;  %v258_v25 = vld [vmem:[%s972_s4 + $0x38] sm:$0xff]  ;;  %v255_v27 = vld [vmem:[%s972_s4 + $0x20] sm:$0xff]  ;;  %v347_v37 = vld [vmem:[%s973_s5 + $0x8] sm:$0xff] }
  0x12   :  { %593 = vmatprep.subr.bf16.mxu1 %v592_v28  ;;  %617 = vmatprep.subr.bf16.mxu0 %v616_v21  ;;  %v620_v26 = vpack.c.bf16 %v258_v25, %v256_v24  ;;  %v257_v28 = vld [vmem:[%s972_s4 + $0x30] sm:$0xff]  ;;  %v504_v30 = vld [vmem:[%s971_s6 + $0x2] ss:$0 sm:$0xff]  ;;  %v367_v48 = vld [vmem:[%s973_s5 + $0xa8] sm:$0xff]  ;;  %v662_v21 = vmov 1983009808  }
  0x13   :  { %619 = vmatpush1.bf16.msra.mxu0 %v618_v23  ;;  %v622_v29 = vpack.c.bf16 %v257_v28, %v255_v27  ;;  %v346_v36 = vld [vmem:[%s973_s5] sm:$0xff]  ;;  %v364_v38 = vld [vmem:[%s973_s5 + $0x90] sm:$0xff]  ;;  %v369_v54 = vld [vmem:[%s973_s5 + $0xb8] sm:$0xff]  ;;  %v338_v22 = vunpack.c.l.s4 %v662_v21 }
  0x14   :  { %621 = vmatprep.subr.bf16.mxu0 %v620_v26  ;;  %v626_v42 = vpack.c.bf16 %v347_v37, %v346_v36  ;;  %v366_v47 = vld [vmem:[%s973_s5 + $0xa0] sm:$0xff]  ;;  %v368_v53 = vld [vmem:[%s973_s5 + $0xb0] sm:$0xff]  ;;  %v371_v60 = vld [vmem:[%s973_s5 + $0xc8] sm:$0xff] }
  0x15   :  { %595 = vmatpush3.bf16.msra.mxu1 %v594_v33  ;;  %v362_v33 = vld [vmem:[%s973_s5 + $0x80] sm:$0xff]  ;;  %v632_v50 = vpack.c.bf16 %v367_v48, %v366_v47  ;;  %v636_v56 = vpack.c.bf16 %v369_v54, %v368_v53  ;;  %v352_v57 = vld [vmem:[%s973_s5 + $0x30] sm:$0xff]  ;;  %v355_v1 = vld [vmem:[%s973_s5 + $0x48] sm:$0xff]  ;;  %v339_v23 = vunpack.c.0.s8 %v338_v22 }
  0x16   :  { %597 = vmatprep.subr.bf16.mxu1 %v596_v34  ;;  %v363_v34 = vld [vmem:[%s973_s5 + $0x88] sm:$0xff]  ;;  %v370_v59 = vld [vmem:[%s973_s5 + $0xc0] sm:$0xff]  ;;  %v372_v3 = vld [vmem:[%s973_s5 + $0xd0] sm:$0xff] }
  0x17   :  { %623 = vmatpush1.bf16.msra.mxu0 %v622_v29  ;;  %v624_v35 = vpack.c.bf16 %v363_v34, %v362_v33  ;;  %v640_v62 = vpack.c.bf16 %v371_v60, %v370_v59  ;;  %v354_v0 = vld [vmem:[%s973_s5 + $0x40] sm:$0xff]  ;;  %v360_v17 = vld [vmem:[%s973_s5 + $0x70] sm:$0xff]  ;;  %v361_v19 = vld [vmem:[%s973_s5 + $0x78] sm:$0xff]  ;;  %v342_v25 = vsub.s32 %v339_v23, %v827_v63 }
  0x18   :  { %v642_v2 = vpack.c.bf16 %v355_v1, %v354_v0  ;;  %v654_v20 = vpack.c.bf16 %v361_v19, %v360_v17  ;;  %v333_v28 = vld [vmem:[%s974_s1] sm:$0xf] }
  0x19   :  { %599 = vmatpush3.bf16.msra.mxu1 %v598_v39  ;;  %625 = vmatprep.subr.bf16.mxu0 %v624_v35  ;;  %v365_v39 = vld [vmem:[%s973_s5 + $0x98] sm:$0xff] }
  0x1a   :  { %601 = vmatprep.subr.bf16.mxu1 %v600_v40  ;;  %v628_v44 = vpack.c.bf16 %v365_v39, %v364_v38 }
  0x1d   :  { %603 = vmatpush3.bf16.msra.mxu1 %v602_v45  ;;  %v348_v45 = vld [vmem:[%s973_s5 + $0x10] sm:$0xff] }
  0x1e   :  { %605 = vmatprep.subr.bf16.mxu1 %v604_v46  ;;  %v349_v46 = vld [vmem:[%s973_s5 + $0x18] sm:$0xff] }
  0x1f   :  { %v630_v49 = vpack.c.bf16 %v349_v46, %v348_v45 }
  0x21   :  { %607 = vmatpush3.bf16.msra.mxu1 %v606_v51  ;;  %v350_v51 = vld [vmem:[%s973_s5 + $0x20] sm:$0xff] }
  0x22   :  { %609 = vmatprep.subr.bf16.mxu1 %v608_v52  ;;  %v351_v52 = vld [vmem:[%s973_s5 + $0x28] sm:$0xff] }
  0x25   :  { %611 = vmatpush3.bf16.msra.mxu1 %v610_v55  ;;  %v634_v55 = vpack.c.bf16 %v351_v52, %v350_v51 }
  0x26   :  { %613 = vmatprep.subr.bf16.mxu1 %v612_v58  ;;  %v353_v58 = vld [vmem:[%s973_s5 + $0x38] sm:$0xff] }
  0x29   :  { %615 = vmatpush3.bf16.msra.mxu1 %v614_v61  ;;  %v638_v61 = vpack.c.bf16 %v353_v58, %v352_v57 }
  0xdf   :  { %v120_v7 = vpop.f32.mrb[0].mxu1 }
  0xe0   :  { %v121_v9 = vadd.f32 %v120_v7, %v43_v4  ;;  %v122_v10 = vpop.f32.mrb[1].mxu1  ;;  %v373_v4 = vld [vmem:[%s973_s5 + $0xd8] sm:$0xff] }
  0xe1   :  { %v123_v11 = vadd.f32 %v122_v10, %v47_v5  ;;  %v644_v5 = vpack.c.bf16 %v373_v4, %v372_v3  ;;  %v357_v7 = vld [vmem:[%s973_s5 + $0x58] sm:$0xff]  ;;  %v375_v10 = vld [vmem:[%s973_s5 + $0xe8] sm:$0xff] }
  0xe2   :  { %v238_v12 = vmul.f32 %v231_v6, %v121_v9  ;;  %v356_v6 = vld [vmem:[%s973_s5 + $0x50] sm:$0xff] }
  0xe3   :  { %v239_v13 = vmul.f32 %v235_v8, %v123_v11  ;;  %221 = vmatprep.mubr.f32.mxu1 %v123_v11  ;;  %v646_v8 = vpack.c.bf16 %v357_v7, %v356_v6 }
  0xe4   :  { %222 = vmatmul.mubr.f32.vlgmr.msra.gmra.mrb[2].mxu1 %v121_v9  ;;  %v241_v14 = vsel %vm240_vm1, %v238_v12, 0.0  ;;  %v374_v9 = vld [vmem:[%s973_s5 + $0xe0] sm:$0xff] }
  0xe5   :  { %v242_v15 = vsel %vm240_vm1, %v239_v13, 0.0  ;;  %v648_v11 = vpack.c.bf16 %v375_v10, %v374_v9  ;;  %v358_v12 = vld [vmem:[%s973_s5 + $0x60] sm:$0xff]  ;;  %v359_v13 = vld [vmem:[%s973_s5 + $0x68] sm:$0xff] }
  0xe6   :  { %v243_v16 = vadd.f32 %v242_v15, %v241_v14  ;;  %v650_v14 = vpack.c.bf16 %v359_v13, %v358_v12  ;;  %v376_v15 = vld [vmem:[%s973_s5 + $0xf0] sm:$0xff] }
  0xe8   :  { %244 = vadd.xlane.f32.xlu0 %v243_v16  ;;  %v377_v16 = vld [vmem:[%s973_s5 + $0xf8] sm:$0xff] }
  0xe9   :  { %v652_v18 = vpack.c.bf16 %v377_v16, %v376_v15 }
 0x175   :  { %v245_v31 = vpop.xlane.xlu0 %244 }
 0x176   :  { %v250_v32 = vadd.f32 %v504_v30, %v245_v31 }
 0x178   :  { %380 = vperm.xlu0 %659, %v250_v32  }
 0x1b7   :  { %v538_v40 = vpop.f32.mrb[2].mxu1 }
 0x1b8   :  { %v539_v41 = vpop.f32.mrb[3].mxu1 }
 0x1b9   :  { %v540_v43 = vadd.f32 %v539_v41, %v538_v40 }
 0x1bb   :  { %505 = vmatmul.mubr.msk.f32.vlgmr.msra.gmra.mrb[0].mxu0 %vm50_vm0, %v540_v43 }
 0x1bc   :  { %627 = vmatpush3.bf16.msra.mxu0 %v626_v42 }
 0x1bd   :  { %629 = vmatprep.subr.bf16.mxu0 %v628_v44 }
 0x1c0   :  { %631 = vmatpush3.bf16.msra.mxu0 %v630_v49 }
 0x1c1   :  { %633 = vmatprep.subr.bf16.mxu0 %v632_v50 }
 0x1c4   :  { %635 = vmatpush3.bf16.msra.mxu0 %v634_v55 }
 0x1c5   :  { %637 = vmatprep.subr.bf16.mxu0 %v636_v56 }
 0x1c8   :  { %639 = vmatpush3.bf16.msra.mxu0 %v638_v61 }
 0x1c9   :  { %641 = vmatprep.subr.bf16.mxu0 %v640_v62 }
 0x1cc   :  { %643 = vmatpush3.bf16.msra.mxu0 %v642_v2 }
 0x1cd   :  { %645 = vmatprep.subr.bf16.mxu0 %v644_v5 }
 0x1d0   :  { %647 = vmatpush3.bf16.msra.mxu0 %v646_v8 }
 0x1d1   :  { %649 = vmatprep.subr.bf16.mxu0 %v648_v11 }
 0x1d4   :  { %651 = vmatpush3.bf16.msra.mxu0 %v650_v14 }
 0x1d5   :  { %653 = vmatprep.subr.bf16.mxu0 %v652_v18 }
 0x1d8   :  { %655 = vmatpush3.bf16.msra.mxu0 %v654_v20 }
 0x1f7   :  { %v381_v36 = vpop.permute.xlu0 %380 }
 0x28e   :  { %v328_v24 = vpop.f32.mrb[0].mxu0 }
 0x28f   :  { %v330_v26 = vpop.f32.mrb[1].mxu0 }
 0x290   :  { %v336_v27 = vcombine.low %v328_v24, %v330_v26 }
 0x292   :  { %v343_v29 = vrot.slane %v336_v27, %v342_v25 }
 0x294   :  { %v345_v30 = vmul.f32 %v343_v29, %v333_v28 }
 0x296   :  { %v390_v31 = vrot.slane %v345_v30, %v342_v25 }
 0x298   :  { %v391_v32 = vcombine.high %v390_v31, %v390_v31 }
 0x29a   :  { %458 = vmatprep.mubr.f32.mxu0 %v391_v32 }
 0x29b   :  { %459 = vmatmul.mubr.f32.vlgmr.msra.gmra.mrb[2].mxu0 %v390_v31 }
 0x36e   :  { %v573_v33 = vpop.f32.mrb[2].mxu0 }
 0x36f   :  { %v574_v34 = vpop.f32.mrb[3].mxu0 }
 0x370   :  { %v575_v35 = vadd.f32 %v574_v34, %v573_v33 }
 0x372   :  { %v461_v37 = vadd.f32 %v575_v35, %v381_v36 }
 0x374   :  { %464 = vxpose.xlu1.b32.start.end [1/1] (short) (narrow) %v461_v37, 8 }
 0x3f4   :  { %v480_v63 = vpop.trf.xlu1 }
 0x3f5   :  { %497 = vst.msk [vmem:[%s975_s7] sm:$0xff] %vm496_vm2, %v480_v63 }

</bundles_post_ra>
